<compile_context>
chip_gen: v5e
topology: v5e:2x2
jax: 0.10.0
libtpu: 0.0.40
codegen_flags: <defaults>
</compile_context>

<pallas_src>
import functools

import jax
import jax.numpy as jnp
from jax.experimental import pallas as pl
from jax.experimental.pallas import tpu as pltpu

IN_FEATURES = 512
OUT_FEATURES = 8
DEFAULT_TILE_B = 4096  # 2 x 4096 x 512 x 4B = 16 MiB double-buffered input (fits everywhere)


def _round_up(n: int, m: int) -> int:
    return ((n + m - 1) // m) * m


def _face_attr_decoder_kernel(x_ref, w_ref, b_ref, out_ref, *, mxu_dtype):
    # x_ref: [TILE_B, 512], w_ref: [512, 8], b_ref: [1, 8], out_ref: [TILE_B, 8]
    x = x_ref[...]
    w = w_ref[...]
    if mxu_dtype is not None:
        # In-kernel cast: cheap VPU work hidden under the HBM stream; MXU runs bf16,
        # accumulation stays f32 via preferred_element_type.
        x = x.astype(mxu_dtype)
        w = w.astype(mxu_dtype)
    y = jnp.dot(x, w, preferred_element_type=jnp.float32)
    y = y + b_ref[...].astype(jnp.float32)  # broadcast bias over batch rows
    # Exact sigmoid: exp on the EUP slot, full-precision divide — free at HBM roofline.
    out_ref[...] = (1.0 / (1.0 + jnp.exp(-y))).astype(out_ref.dtype)


def prepare_params(weight, bias):
    """One-time param prep: transpose nn.Linear weight [8,512] -> [512,8], bias -> [1,8]."""
    w_t = jnp.asarray(weight).T.astype(jnp.float32)                 # [512, 8]
    b2d = jnp.asarray(bias).reshape(1, OUT_FEATURES).astype(jnp.float32)
    return w_t, b2d


def face_attribute_decoder(x, mask, w_t, b2d, *, tile_b=DEFAULT_TILE_B,
                           mxu_dtype=jnp.bfloat16):
    """Pallas equivalent of FaceAttributeDecoder.forward.

    x:    [B, 512]   (streamed from HBM tile-by-tile, dtype preserved — no wrapper cast)
    mask: passed through unchanged
    w_t:  [512, 8]   (pre-transposed Linear weight, see prepare_params)
    b2d:  [1, 8]
    returns (sigmoid(x @ w_t + b), mask)
    """
    B = x.shape[0]
    assert x.shape[1] == IN_FEATURES
    out_dtype = x.dtype

    # Batch tile: multiple of 16 (bf16 sublane packing), no larger than needed, and
    # capped so mid-size batches still produce >= 2 tiles (feeds both TCs on v7x).
    tile = _round_up(min(int(tile_b), B), 16)
    if B > 2 * 16:
        tile = min(tile, _round_up(pl.cdiv(B, 2), 16))
    num_tiles = pl.cdiv(B, tile)  # last block may be partial -> Pallas masks it

    # VMEM budget: double-buffered x tile + tiny out/weight/bias buffers + slack.
    x_bytes = 2 * tile * IN_FEATURES * jnp.dtype(x.dtype).itemsize
    out_bytes = 2 * tile * OUT_FEATURES * jnp.dtype(out_dtype).itemsize
    wb_bytes = 2 * (IN_FEATURES * OUT_FEATURES + OUT_FEATURES) * 4
    vmem_limit = int(min(max(x_bytes + out_bytes + wb_bytes + (2 << 20), 32 << 20), 56 << 20))

    kernel = functools.partial(_face_attr_decoder_kernel, mxu_dtype=mxu_dtype)

    out = pl.pallas_call(
        kernel,
        out_shape=jax.ShapeDtypeStruct((B, OUT_FEATURES), out_dtype),
        grid_spec=pltpu.PrefetchScalarGridSpec(
            num_scalar_prefetch=0,
            grid=(num_tiles,),
            in_specs=[
                # x: streamed tile-by-tile along the batch axis (pipelined DMA).
                pl.BlockSpec((tile, IN_FEATURES), lambda i: (i, 0)),
                # weight / bias: constant block index -> fetched once, stay resident.
                pl.BlockSpec((IN_FEATURES, OUT_FEATURES), lambda i: (0, 0)),
                pl.BlockSpec((1, OUT_FEATURES), lambda i: (0, 0)),
            ],
            out_specs=pl.BlockSpec((tile, OUT_FEATURES), lambda i: (i, 0)),
        ),
        compiler_params=pltpu.CompilerParams(
            dimension_semantics=("parallel",),  # shards batch tiles across TCs on v7x
            vmem_limit_bytes=vmem_limit,
        ),
    )(x, w_t, b2d)

    return out, mask


def init_params(key):
    """Deterministic init mimicking nn.Linear(512, 8) default (uniform +/- 1/sqrt(fan_in))."""
    k_w, k_b = jax.random.split(key)
    bound = 1.0 / jnp.sqrt(jnp.float32(IN_FEATURES))
    weight = jax.random.uniform(
        k_w, (OUT_FEATURES, IN_FEATURES), jnp.float32, minval=-bound, maxval=bound
    )
    bias = jax.random.uniform(
        k_b, (OUT_FEATURES,), jnp.float32, minval=-bound, maxval=bound
    )
    return weight, bias


if __name__ == "__main__":
    key = jax.random.PRNGKey(0)
    k_params, k_x, k_mask, k_x2 = jax.random.split(key, 4)

    weight, bias = init_params(k_params)
    w_t, b2d = prepare_params(weight, bias)  # hoisted, done once

    def ref_f32(xx):
        return jax.nn.sigmoid(xx @ weight.T + bias)

    def ref_bf16_mxu(xx):
        # Emulates the kernel's bf16-operand / f32-accumulate matmul.
        xb = xx.astype(jnp.bfloat16).astype(jnp.float32)
        wb = w_t.astype(jnp.bfloat16).astype(jnp.float32)
        return jax.nn.sigmoid(jnp.dot(xb, wb) + bias)

    # --- small-batch check (single tile) ---
    B = 8
    x = jax.random.normal(k_x, (B, IN_FEATURES), dtype=jnp.float32)
    mask = (jax.random.uniform(k_mask, (B, OUT_FEATURES)) > 0.5).astype(jnp.float32)

    out, mask_out = face_attribute_decoder(x, mask, w_t, b2d)
    out = jax.block_until_ready(out)
    mask_out = jax.block_until_ready(mask_out)

    assert out.shape == (B, OUT_FEATURES)
    assert jnp.allclose(out, ref_bf16_mxu(x), atol=1e-4), "mismatch vs bf16-MXU reference"
    assert jnp.allclose(out, ref_f32(x), atol=2e-2), "mismatch vs f32 reference"
    assert jnp.array_equal(mask_out, mask), "mask must pass through unchanged"

    # --- multi-tile + ragged-final-block check (no wrapper padding anymore) ---
    B2 = 24  # splits into 2 tiles of 16 rows; last block is partial (masked by Pallas)
    x2 = jax.random.normal(k_x2, (B2, IN_FEATURES), dtype=jnp.float32)
    mask2 = jnp.ones((B2, OUT_FEATURES), dtype=jnp.float32)

    out2, _ = face_attribute_decoder(x2, mask2, w_t, b2d)
    out2 = jax.block_until_ready(out2)

    assert out2.shape == (B2, OUT_FEATURES)
    assert jnp.allclose(out2, ref_bf16_mxu(x2), atol=1e-4), "mismatch vs bf16-MXU reference (tiled)"
    assert jnp.allclose(out2, ref_f32(x2), atol=2e-2), "mismatch vs f32 reference (tiled)"

    print("KERNEL_OK")
</pallas_src>

<mosaic_0001>
module attributes {stable_mosaic.version = 11 : i64} {
  func.func @_face_attr_decoder_kernel(%arg0: i32, %arg1: memref<16x512xf32, #tpu.memory_space<vmem>>, %arg2: memref<512x8xf32, #tpu.memory_space<vmem>>, %arg3: memref<1x8xf32, #tpu.memory_space<vmem>>, %arg4: memref<16x8xf32, #tpu.memory_space<vmem>>) attributes {dimension_semantics = [#tpu.dimension_semantics<parallel>], iteration_bounds = array<i64: 1>, scalar_prefetch = 0 : i64, scratch_operands = 0 : i64, tpu.core_type = #tpu.core_type<tc>, window_params = [{transform_indices = @transform_0, window_bounds = array<i64: 16, 512>}, {pipeline_mode = #tpu.pipeline_mode<synchronous>, transform_indices = @transform_1, window_bounds = array<i64: 512, 8>}, {pipeline_mode = #tpu.pipeline_mode<synchronous>, transform_indices = @transform_2, window_bounds = array<i64: 1, 8>}, {transform_indices = @transform_3, window_bounds = array<i64: 16, 8>}]} {
    %c0 = arith.constant 0 : index
    %c0_0 = arith.constant 0 : index
    %0 = vector.load %arg1[%c0, %c0_0] : memref<16x512xf32, #tpu.memory_space<vmem>>, vector<16x512xf32>
    %c0_1 = arith.constant 0 : index
    %c0_2 = arith.constant 0 : index
    %1 = vector.load %arg2[%c0_1, %c0_2] : memref<512x8xf32, #tpu.memory_space<vmem>>, vector<512x8xf32>
    %2 = arith.truncf %0 : vector<16x512xf32> to vector<16x512xbf16>
    %3 = arith.truncf %1 : vector<512x8xf32> to vector<512x8xbf16>
    %cst = arith.constant dense<0.000000e+00> : vector<16x8xf32>
    %4 = tpu.matmul %2, %3, %cst {dimension_numbers = #tpu.dot_dimension_numbers<[1], [0], [0], [1], [0, 0, 1, 1], [], []>} : vector<16x512xbf16>, vector<512x8xbf16>, vector<16x8xf32> -> vector<16x8xf32>
    %c0_3 = arith.constant 0 : index
    %c0_4 = arith.constant 0 : index
    %5 = vector.load %arg3[%c0_3, %c0_4] : memref<1x8xf32, #tpu.memory_space<vmem>>, vector<1x8xf32>
    %6 = vector.broadcast %5 : vector<1x8xf32> to vector<16x8xf32>
    %7 = arith.addf %4, %6 : vector<16x8xf32>
    %cst_5 = arith.constant 0.000000e+00 : f32
    %8 = vector.broadcast %cst_5 : f32 to vector<16x8xf32>
    %9 = arith.subf %8, %7 : vector<16x8xf32>
    %10 = math.exp %9 : vector<16x8xf32>
    %cst_6 = arith.constant 1.000000e+00 : f32
    %11 = vector.broadcast %cst_6 : f32 to vector<16x8xf32>
    %12 = arith.addf %11, %10 : vector<16x8xf32>
    %cst_7 = arith.constant 1.000000e+00 : f32
    %13 = vector.broadcast %cst_7 : f32 to vector<16x8xf32>
    %14 = arith.divf %13, %12 : vector<16x8xf32>
    %c0_8 = arith.constant 0 : index
    %c0_9 = arith.constant 0 : index
    %15 = vector.load %arg4[%c0_8, %c0_9] : memref<16x8xf32, #tpu.memory_space<vmem>>, vector<16x8xf32>
    tpu.vector_store %arg4[%c0_8, %c0_9], %14 {strides = array<i32>} : memref<16x8xf32, #tpu.memory_space<vmem>>, vector<16x8xf32>,
    return
  }
  func.func @transform_0(%arg0: i32) -> (i32, i32) {
    %c0_i32 = arith.constant 0 : i32
    %c0_i32_0 = arith.constant 0 : i32
    return %arg0, %c0_i32 : i32, i32
  }
  func.func @transform_1(%arg0: i32) -> (i32, i32) {
    %c0_i32 = arith.constant 0 : i32
    %c0_i32_0 = arith.constant 0 : i32
    %c0_i32_1 = arith.constant 0 : i32
    return %c0_i32, %c0_i32_0 : i32, i32
  }
  func.func @transform_2(%arg0: i32) -> (i32, i32) {
    %c0_i32 = arith.constant 0 : i32
    %c0_i32_0 = arith.constant 0 : i32
    %c0_i32_1 = arith.constant 0 : i32
    return %c0_i32, %c0_i32_0 : i32, i32
  }
  func.func @transform_3(%arg0: i32) -> (i32, i32) {
    %c0_i32 = arith.constant 0 : i32
    %c0_i32_0 = arith.constant 0 : i32
    return %arg0, %c0_i32 : i32, i32
  }
}

</mosaic_0001>

<bundles_post_ra>
// kernel: tpu_custom_call.1
= control target key start
LH: loop header
LB: loop body
LE: loop exit
PB: predicated region body
PF: predicated region fallthrough
CT: control target
= control target key end

     0   :  { %8 = vsyncpa [#allocation3], 0  ;;  %vm221_vm3 = vcmask 64512   ;;  %s527_s0 = inlined_call_operand.vmem [shape: f32[8,512], index: 0, kind: input, shape index: {}]   ;;  %s528_s1 = inlined_call_operand.vmem [shape: f32[512,8], index: 1, kind: input, shape index: {}]   ;;  %s529_s2 = inlined_call_operand.vmem [shape: f32[1,8], index: 2, kind: input, shape index: {}]   ;;  %s530_s3 = inlined_call_operand.hbm [shape: f32[8,8], index: 3, kind: output, shape index: {}]  }
   0x1   :  { %v37_v0 = vld [vmem:[%s528_s1 + $0x70] sm:$0xff]  ;;  %v38_v1 = vld [vmem:[%s528_s1 + $0x78] sm:$0xff]  ;;  %v35_v12 = vld [vmem:[%s528_s1 + $0x60] sm:$0xff] }
   0x2   :  { %v98_v2 = vpack.c.bf16 %v38_v1, %v37_v0  ;;  %v53_v3 = vld [vmem:[%s528_s1 + $0xf0] sm:$0xff]  ;;  %v54_v4 = vld [vmem:[%s528_s1 + $0xf8] sm:$0xff]  ;;  %v36_v13 = vld [vmem:[%s528_s1 + $0x68] sm:$0xff] }
   0x3   :  { %v69_v5 = vld [vmem:[%s528_s1 + $0x170] sm:$0xff]  ;;  %v106_v6 = vpack.c.bf16 %v54_v4, %v53_v3  ;;  %v70_v7 = vld [vmem:[%s528_s1 + $0x178] sm:$0xff]  ;;  %v51_v14 = vld [vmem:[%s528_s1 + $0xe0] sm:$0xff]  ;;  %v97_v15 = vpack.c.bf16 %v36_v13, %v35_v12 }
   0x4   :  { %v85_v8 = vld [vmem:[%s528_s1 + $0x1f0] sm:$0xff]  ;;  %v86_v9 = vld [vmem:[%s528_s1 + $0x1f8] sm:$0xff]  ;;  %127 = vmatpush.bf16.msra.mxu0 %v98_v2  ;;  %v114_v10 = vpack.c.bf16 %v70_v7, %v69_v5  ;;  %v52_v16 = vld [vmem:[%s528_s1 + $0xe8] sm:$0xff] }
   0x5   :  { %v122_v11 = vpack.c.bf16 %v86_v9, %v85_v8  ;;  %141 = vmatpush.bf16.msra.mxu1 %v106_v6  ;;  %v67_v17 = vld [vmem:[%s528_s1 + $0x160] sm:$0xff]  ;;  %v68_v18 = vld [vmem:[%s528_s1 + $0x168] sm:$0xff]  ;;  %v105_v19 = vpack.c.bf16 %v52_v16, %v51_v14  ;;  %v33_v23 = vld [vmem:[%s528_s1 + $0x50] sm:$0xff] }
   0x6   :  { %155 = vmatpush.bf16.msra.mxu2 %v114_v10  ;;  %v113_v20 = vpack.c.bf16 %v68_v18, %v67_v17  ;;  %v83_v21 = vld [vmem:[%s528_s1 + $0x1e0] sm:$0xff]  ;;  %v84_v22 = vld [vmem:[%s528_s1 + $0x1e8] sm:$0xff]  ;;  %v34_v25 = vld [vmem:[%s528_s1 + $0x58] sm:$0xff] }
   0x7   :  { %169 = vmatpush.bf16.msra.mxu3 %v122_v11  ;;  %v121_v24 = vpack.c.bf16 %v84_v22, %v83_v21  ;;  %v49_v26 = vld [vmem:[%s528_s1 + $0xd0] sm:$0xff]  ;;  %v50_v27 = vld [vmem:[%s528_s1 + $0xd8] sm:$0xff]  ;;  %v96_v28 = vpack.c.bf16 %v34_v25, %v33_v23  ;;  %v31_v34 = vld [vmem:[%s528_s1 + $0x40] sm:$0xff] }
   0x8   :  { %128 = vmatpush.bf16.msra.mxu0 %v97_v15  ;;  %v65_v29 = vld [vmem:[%s528_s1 + $0x150] sm:$0xff]  ;;  %v66_v30 = vld [vmem:[%s528_s1 + $0x158] sm:$0xff]  ;;  %v104_v32 = vpack.c.bf16 %v50_v27, %v49_v26  ;;  %v32_v35 = vld [vmem:[%s528_s1 + $0x48] sm:$0xff] }
   0x9   :  { %v81_v31 = vld [vmem:[%s528_s1 + $0x1d0] sm:$0xff]  ;;  %142 = vmatpush.bf16.msra.mxu1 %v105_v19  ;;  %v82_v33 = vld [vmem:[%s528_s1 + $0x1d8] sm:$0xff]  ;;  %v112_v36 = vpack.c.bf16 %v66_v30, %v65_v29  ;;  %v47_v38 = vld [vmem:[%s528_s1 + $0xc0] sm:$0xff]  ;;  %v95_v44 = vpack.c.bf16 %v32_v35, %v31_v34 }
   0xa   :  { %156 = vmatpush.bf16.msra.mxu2 %v113_v20  ;;  %v120_v37 = vpack.c.bf16 %v82_v33, %v81_v31  ;;  %v48_v39 = vld [vmem:[%s528_s1 + $0xc8] sm:$0xff]  ;;  %v63_v40 = vld [vmem:[%s528_s1 + $0x140] sm:$0xff]  ;;  %v29_v46 = vld [vmem:[%s528_s1 + $0x30] sm:$0xff] }
   0xb   :  { %170 = vmatpush.bf16.msra.mxu3 %v121_v24  ;;  %v64_v41 = vld [vmem:[%s528_s1 + $0x148] sm:$0xff]  ;;  %v79_v42 = vld [vmem:[%s528_s1 + $0x1c0] sm:$0xff]  ;;  %v103_v45 = vpack.c.bf16 %v48_v39, %v47_v38  ;;  %v30_v47 = vld [vmem:[%s528_s1 + $0x38] sm:$0xff] }
   0xc   :  { %v80_v43 = vld [vmem:[%s528_s1 + $0x1c8] sm:$0xff]  ;;  %129 = vmatpush.bf16.msra.mxu0 %v96_v28  ;;  %v111_v48 = vpack.c.bf16 %v64_v41, %v63_v40  ;;  %v45_v50 = vld [vmem:[%s528_s1 + $0xb0] sm:$0xff]  ;;  %v46_v51 = vld [vmem:[%s528_s1 + $0xb8] sm:$0xff]  ;;  %v94_v56 = vpack.c.bf16 %v30_v47, %v29_v46 }
   0xd   :  { %143 = vmatpush.bf16.msra.mxu1 %v104_v32  ;;  %v119_v49 = vpack.c.bf16 %v80_v43, %v79_v42  ;;  %v61_v52 = vld [vmem:[%s528_s1 + $0x130] sm:$0xff]  ;;  %v62_v53 = vld [vmem:[%s528_s1 + $0x138] sm:$0xff]  ;;  %v102_v57 = vpack.c.bf16 %v46_v51, %v45_v50  ;;  %v27_v58 = vld [vmem:[%s528_s1 + $0x20] sm:$0xff] }
   0xe   :  { %157 = vmatpush.bf16.msra.mxu2 %v112_v36  ;;  %v77_v54 = vld [vmem:[%s528_s1 + $0x1b0] sm:$0xff]  ;;  %v78_v55 = vld [vmem:[%s528_s1 + $0x1b8] sm:$0xff]  ;;  %v28_v59 = vld [vmem:[%s528_s1 + $0x28] sm:$0xff]  ;;  %v110_v60 = vpack.c.bf16 %v62_v53, %v61_v52 }
   0xf   :  { %171 = vmatpush.bf16.msra.mxu3 %v120_v37  ;;  %v118_v61 = vpack.c.bf16 %v78_v55, %v77_v54  ;;  %v43_v62 = vld [vmem:[%s528_s1 + $0xa0] sm:$0xff]  ;;  %v44_v63 = vld [vmem:[%s528_s1 + $0xa8] sm:$0xff]  ;;  %v93_v4 = vpack.c.bf16 %v28_v59, %v27_v58  ;;  %v25_v6 = vld [vmem:[%s528_s1 + $0x10] sm:$0xff] }
  0x10   :  { %130 = vmatpush.bf16.msra.mxu0 %v95_v44  ;;  %v59_v0 = vld [vmem:[%s528_s1 + $0x120] sm:$0xff]  ;;  %v60_v1 = vld [vmem:[%s528_s1 + $0x128] sm:$0xff]  ;;  %v101_v5 = vpack.c.bf16 %v44_v63, %v43_v62  ;;  %v26_v7 = vld [vmem:[%s528_s1 + $0x18] sm:$0xff] }
  0x11   :  { %144 = vmatpush.bf16.msra.mxu1 %v103_v45  ;;  %v75_v2 = vld [vmem:[%s528_s1 + $0x1a0] sm:$0xff]  ;;  %v76_v3 = vld [vmem:[%s528_s1 + $0x1a8] sm:$0xff]  ;;  %v109_v8 = vpack.c.bf16 %v60_v1, %v59_v0  ;;  %v41_v10 = vld [vmem:[%s528_s1 + $0x90] sm:$0xff]  ;;  %v92_v16 = vpack.c.bf16 %v26_v7, %v25_v6 }
  0x12   :  { %158 = vmatpush.bf16.msra.mxu2 %v111_v48  ;;  %v117_v9 = vpack.c.bf16 %v76_v3, %v75_v2  ;;  %v42_v11 = vld [vmem:[%s528_s1 + $0x98] sm:$0xff]  ;;  %v57_v12 = vld [vmem:[%s528_s1 + $0x110] sm:$0xff]  ;;  %v23_v18 = vld [vmem:[%s528_s1] sm:$0xff] }
  0x13   :  { %172 = vmatpush.bf16.msra.mxu3 %v119_v49  ;;  %v58_v13 = vld [vmem:[%s528_s1 + $0x118] sm:$0xff]  ;;  %v73_v14 = vld [vmem:[%s528_s1 + $0x190] sm:$0xff]  ;;  %v100_v17 = vpack.c.bf16 %v42_v11, %v41_v10  ;;  %v24_v19 = vld [vmem:[%s528_s1 + $0x8] sm:$0xff] }
  0x14   :  { %131 = vmatpush.bf16.msra.mxu0 %v94_v56  ;;  %v74_v15 = vld [vmem:[%s528_s1 + $0x198] sm:$0xff]  ;;  %v108_v20 = vpack.c.bf16 %v58_v13, %v57_v12  ;;  %v39_v22 = vld [vmem:[%s528_s1 + $0x80] sm:$0xff]  ;;  %v40_v23 = vld [vmem:[%s528_s1 + $0x88] sm:$0xff]  ;;  %v91_v28 = vpack.c.bf16 %v24_v19, %v23_v18 }
  0x15   :  { %145 = vmatpush.bf16.msra.mxu1 %v102_v57  ;;  %v116_v21 = vpack.c.bf16 %v74_v15, %v73_v14  ;;  %v55_v24 = vld [vmem:[%s528_s1 + $0x100] sm:$0xff]  ;;  %v56_v25 = vld [vmem:[%s528_s1 + $0x108] sm:$0xff]  ;;  %v99_v31 = vpack.c.bf16 %v40_v23, %v39_v22  ;;  %v17_v34 = vld [vmem:[%s527_s0 + $0x10] sm:$0xff] }
  0x16   :  { %159 = vmatpush.bf16.msra.mxu2 %v110_v60  ;;  %v71_v26 = vld [vmem:[%s528_s1 + $0x180] sm:$0xff]  ;;  %v72_v27 = vld [vmem:[%s528_s1 + $0x188] sm:$0xff]  ;;  %v107_v35 = vpack.c.bf16 %v56_v25, %v55_v24  ;;  %v21_v37 = vld [vmem:[%s527_s0 + $0x30] sm:$0xff] }
  0x17   :  { %173 = vmatpush.bf16.msra.mxu3 %v118_v61  ;;  %v15_v29 = vld [vmem:[%s527_s0] sm:$0xff]  ;;  %v16_v32 = vld [vmem:[%s527_s0 + $0x8] sm:$0xff]  ;;  %v115_v36 = vpack.c.bf16 %v72_v27, %v71_v26  ;;  %v18_v38 = vld [vmem:[%s527_s0 + $0x18] sm:$0xff]  ;;  %v89_v42 = vpack.c.bf16 %v21_v37, %v17_v34 }
  0x18   :  { %132 = vmatpush.bf16.msra.mxu0 %v93_v4  ;;  %v19_v30 = vld [vmem:[%s527_s0 + $0x20] sm:$0xff]  ;;  %v20_v33 = vld [vmem:[%s527_s0 + $0x28] sm:$0xff]  ;;  %v22_v39 = vld [vmem:[%s527_s0 + $0x38] sm:$0xff] }
  0x19   :  { %146 = vmatpush.bf16.msra.mxu1 %v101_v5  ;;  %v87_v40 = vpack.c.bf16 %v19_v30, %v15_v29  ;;  %v88_v41 = vpack.c.bf16 %v20_v33, %v16_v32  ;;  %v90_v43 = vpack.c.bf16 %v22_v39, %v18_v38  ;;  %v245_v44 = vld [vmem:[%s529_s2] ss:$0 sm:$0xff] }
  0x1a   :  { %160 = vmatpush.bf16.msra.mxu2 %v109_v8 }
  0x1b   :  { %174 = vmatpush.bf16.msra.mxu3 %v117_v9 }
  0x1c   :  { %133 = vmatpush.bf16.msra.mxu0 %v92_v16 }
  0x1d   :  { %147 = vmatpush.bf16.msra.mxu1 %v100_v17 }
  0x1e   :  { %161 = vmatpush.bf16.msra.mxu2 %v108_v20 }
  0x1f   :  { %175 = vmatpush.bf16.msra.mxu3 %v116_v21 }
  0x20   :  { %134 = vmatpush.bf16.msra.mxu0 %v91_v28 }
  0x21   :  { %148 = vmatpush.bf16.msra.mxu1 %v99_v31 }
  0x22   :  { %162 = vmatpush.bf16.msra.mxu2 %v107_v35 }
  0x23   :  { %176 = vmatpush.bf16.msra.mxu3 %v115_v36  ;;  %135 = vmatmul.bf16.vlgmr.msra.gmra.mxu0 %v87_v40 }
  0x24   :  { %149 = vmatmul.bf16.vlgmr.msra.gmra.mxu1 %v88_v41 }
  0x25   :  { %163 = vmatmul.bf16.vlgmr.msra.gmra.mxu2 %v89_v42 }
  0x26   :  { %177 = vmatmul.bf16.vlgmr.msra.gmra.mxu3 %v90_v43 }
  0xa0   :  { %v136_v45 = vpop.f32.mrf.mxu0 }
  0xa1   :  { %v137_v46 = vadd.f32 %v245_v44, %v136_v45  ;;  %v150_v47 = vpop.f32.mrf.mxu1 }
  0xa3   :  { %v151_v48 = vadd.f32 %v150_v47, %v137_v46 }
  0xa8   :  { %v164_v49 = vpop.f32.mrf.mxu2  ;;  %v138_v52 = vpop.f32.mrf.mxu0 }
  0xa9   :  { %v178_v50 = vpop.f32.mrf.mxu3  ;;  %v165_v51 = vadd.f32 %v164_v49, %v151_v48  ;;  %v139_v54 = vadd.f32 %v245_v44, %v138_v52  ;;  %v152_v56 = vpop.f32.mrf.mxu1 }
  0xab   :  { %v179_v53 = vadd.f32 %v178_v50, %v165_v51  ;;  %v153_v58 = vadd.f32 %v152_v56, %v139_v54 }
  0xad   :  { %v183_v55 = vsub.f32 0.0, %v179_v53 }
  0xaf   :  { %v185_v57 = vmul.f32 1.442695, %v183_v55 }
  0xb0   :  { %v166_v59 = vpop.f32.mrf.mxu2 }
  0xb1   :  { %246 = vpow2.f32 %v185_v57  ;;  %v167_v60 = vadd.f32 %v166_v59, %v153_v58  ;;  %v180_v61 = vpop.f32.mrf.mxu3 }
  0xb3   :  { %v181_v62 = vadd.f32 %v180_v61, %v167_v60 }
  0xb5   :  { %v184_v63 = vsub.f32 0.0, %v181_v62 }
  0xb7   :  { %v247_v0 = vpop.eup %246  ;;  %v187_v1 = vmul.f32 1.442695, %v184_v63 }
  0xb8   :  { %v189_v2 = vadd.f32 1.0, %v247_v0 }
  0xb9   :  { %248 = vpow2.f32 %v187_v1 }
  0xba   :  { %250 = vrcp.f32 %v189_v2  ;;  %v202_v8 = vand.u32 2147483648, %v189_v2  ;;  %v200_v10 = vand.u32 2147483647, %v189_v2  ;;  %vm196_vm1 = vweird.f32 %v189_v2 }
  0xbc   :  { %v203_v13 = vor.u32 1.1754944e-38, %v202_v8  ;;  %vm201_vm4 = vcmp.eq.f32.partialorder %v200_v10, 8.507059e+37 }
  0xbf   :  { %v249_v3 = vpop.eup %248 }
  0xc0   :  { %v251_v4 = vpop.eup %250  ;;  %v190_v5 = vadd.f32 1.0, %v249_v3 }
  0xc1   :  { %v192_v6 = vmul.f32 %v251_v4, %v189_v2  ;;  %vm197_vm0 = vweird.f32 %v251_v4 }
  0xc2   :  { %252 = vrcp.f32 %v190_v5  ;;  %vm198_vm2 = vmor %vm196_vm1, %vm197_vm0  ;;  %v217_v18 = vand.u32 2147483648, %v190_v5  ;;  %v215_v20 = vand.u32 2147483647, %v190_v5  ;;  %vm211_vm6 = vweird.f32 %v190_v5 }
  0xc3   :  { %v193_v7 = vsub.f32 1.0, %v192_v6 }
  0xc4   :  { %v218_v22 = vor.u32 1.1754944e-38, %v217_v18  ;;  %vm216_vm8 = vcmp.eq.f32.partialorder %v215_v20, 8.507059e+37 }
  0xc5   :  { %v194_v9 = vmul.f32 %v251_v4, %v193_v7 }
  0xc7   :  { %v195_v11 = vadd.f32 %v251_v4, %v194_v9 }
  0xc8   :  { %v253_v12 = vpop.eup %252 }
  0xc9   :  { %v199_v14 = vsel %vm198_vm2, %v251_v4, %v195_v11  ;;  %v207_v15 = vmul.f32 %v253_v12, %v190_v5  ;;  %vm212_vm5 = vweird.f32 %v253_v12 }
  0xca   :  { %v204_v16 = vsel %vm201_vm4, %v203_v13, %v199_v14  ;;  %vm213_vm7 = vmor %vm211_vm6, %vm212_vm5 }
  0xcb   :  { %222 = vst.msk [vmem:[#allocation2] sm:$0xff] %vm221_vm3, %v204_v16  ;;  %v208_v17 = vsub.f32 1.0, %v207_v15 }
  0xcd   :  { %v209_v19 = vmul.f32 %v253_v12, %v208_v17 }
  0xcf   :  { %v210_v21 = vadd.f32 %v253_v12, %v209_v19 }
  0xd1   :  { %v214_v23 = vsel %vm213_vm7, %v253_v12, %v210_v21 }
  0xd2   :  { %v219_v24 = vsel %vm216_vm8, %v218_v22, %v214_v23 }
  0xd3   :  { %223 = vst.msk [vmem:[#allocation2 + $0x8] sm:$0xff] %vm221_vm3, %v219_v24 }
  0xd4   :  { %227 = vsyncadd [#allocation3], 128  ;;  %s230_s22 = sshll.u32 %s530_s3, 4  ;;  %s280_s23 = smov [#allocation2]   ;;  %s231_s22 = int_to_ptr.hbm [resolvable:$true] %s230_s22 }
  0xd5   :  { %s228_s24 = sshll.u32 %s280_s23, 4  ;;  %s281_s25 = smov 128   ;;  %s229_s24 = int_to_ptr.vmem [resolvable:$true] %s228_s24 }
  0xd6   :  { %s282_s26 = smov 8  }
  0xd7   :  { %236 = dma.vmem_to_hbm [thread:$0]  %s229_s24, 128, %s231_s22, [#allocation3], %s281_s25, %s281_s25, %s282_s26  }
  0xd8   :  { %278 = dma.done.wait [#allocation3], 256  }
  0xd9   :  { %279 = vsyncadd [#allocation3], 4294967040 }
  0xda   :  { %241 = vsyncpa [#allocation3], 1 }

</bundles_post_ra>
